<compile_context>
chip_gen: v6e
topology: v6e:2x2x1
jax: 0.10.0
libtpu: 0.0.40
codegen_flags: <defaults>
</compile_context>

<pallas_src>
import functools

import jax
import jax.numpy as jnp
from jax.experimental import pallas as pl
from jax.experimental.pallas import tpu as pltpu


def _silu(x):
    # x * logistic(x): keeps exp on the EUP slot, no full-precision divide.
    return x * jax.nn.sigmoid(x)


def _round_up(x, m):
    return ((x + m - 1) // m) * m


# ---------------------------------------------------------------------------
# Kernel 1: node-side projections (hoisted first edge-MLP matmul)
#   Pa = h @ W1a + b1 ,  Pb = h @ W1b        (grid over N tiles, "parallel")
# ---------------------------------------------------------------------------
def proj_kernel(h_ref, w1a_ref, w1b_ref, b1_ref, pa_ref, pb_ref, *, compute_dtype):
    f32 = jnp.float32
    h = h_ref[...].astype(compute_dtype)
    pa_ref[...] = (jnp.dot(h, w1a_ref[...], preferred_element_type=f32)
                   + b1_ref[...])
    pb_ref[...] = jnp.dot(h, w1b_ref[...], preferred_element_type=f32)


# ---------------------------------------------------------------------------
# Kernel 2: edge MLP + unsorted_segment_sum over edges
#   grid over E tiles ("arbitrary"); agg [N,H] is a VMEM-resident accumulator
#   (constant out index_map), initialized at the first tile with pl.when.
#   One-hot built in-kernel from iota == row (no [N,E] matrix in HBM).
# ---------------------------------------------------------------------------
def edge_kernel(pre_ref, radial_ref, row_ref, w1r_ref, w2_ref, b2_ref,
                agg_ref, *, compute_dtype):
    f32 = jnp.float32

    @pl.when(pl.program_id(0) == 0)
    def _():
        agg_ref[...] = jnp.zeros_like(agg_ref)

    # edge_mlp layer 1: pre already holds h[row]@W1a + h[col]@W1b + b1.
    t = pre_ref[...] + radial_ref[...] * w1r_ref[...]          # [Et, H] f32
    t = _silu(t)
    # edge_mlp layer 2
    e = jnp.dot(t.astype(compute_dtype), w2_ref[...],
                preferred_element_type=f32) + b2_ref[...]
    e = _silu(e)                                               # [Et, H] f32

    # segment-sum: onehot[e, n] = (row[e] == n); contract over the edge tile.
    n_nodes = agg_ref.shape[0]
    et = row_ref.shape[0]
    node_ids = jax.lax.broadcasted_iota(jnp.int32, (et, n_nodes), 1)
    onehot = (row_ref[...] == node_ids).astype(compute_dtype)  # [Et, N]
    agg_ref[...] += jax.lax.dot_general(
        onehot, e.astype(compute_dtype),
        dimension_numbers=(((0,), (0,)), ((), ())),
        preferred_element_type=f32)                            # [N, H]


# ---------------------------------------------------------------------------
# Kernel 3: node MLP + residual + per-graph scatter-add
#   grid over N tiles ("arbitrary": hsc accumulates across the axis).
# ---------------------------------------------------------------------------
def node_kernel(h_ref, agg_ref, batch_ref, w3a_ref, w3b_ref, b3_ref,
                w4_ref, b4_ref, hout_ref, hsc_ref, *, compute_dtype):
    f32 = jnp.float32
    h = h_ref[...]                                             # [Nt, F] f32

    m = (jnp.dot(h.astype(compute_dtype), w3a_ref[...], preferred_element_type=f32)
         + jnp.dot(agg_ref[...].astype(compute_dtype), w3b_ref[...],
                   preferred_element_type=f32)
         + b3_ref[...])
    m = _silu(m)
    out = jnp.dot(m.astype(compute_dtype), w4_ref[...],
                  preferred_element_type=f32) + b4_ref[...]
    h_new = h + out                                            # residual
    hout_ref[...] = h_new

    @pl.when(pl.program_id(0) == 0)
    def _():
        hsc_ref[...] = jnp.zeros_like(hsc_ref)

    # scatter(h_new, batch, reduce='add'): one-hot built in-kernel (f32 for
    # accumulation accuracy; this matmul is tiny).
    nt = batch_ref.shape[0]
    g = hsc_ref.shape[0]
    graph_ids = jax.lax.broadcasted_iota(jnp.int32, (nt, g), 1)
    onehot_g = (batch_ref[...] == graph_ids).astype(f32)       # [Nt, G]
    hsc_ref[...] += jax.lax.dot_general(
        onehot_g, h_new,
        dimension_numbers=(((0,), (0,)), ((), ())),
        preferred_element_type=f32)                            # [G, O]


# ---------------------------------------------------------------------------
# Wrapper: glue (radial, padding, gathers) + three pallas_call's.
# ---------------------------------------------------------------------------
def egcl_forward(h, edge_index, coord, batch, params, num_graphs, *,
                 block_n=256, block_e=512, compute_dtype=jnp.float32,
                 vmem_limit_bytes=None):
    """Returns (h_new, None, h_scatter), matching E_GCL.forward semantics."""
    row, col = edge_index
    N, F = h.shape
    E = row.shape[0]
    H = params["w2"].shape[0]
    O = params["w4"].shape[1]
    G = num_graphs
    f32 = jnp.float32
    cdt = compute_dtype

    # Tile sizes: sublane-aligned (x8), clamped to the padded problem size.
    bn = _round_up(min(block_n, _round_up(N, 8)), 8)
    be = _round_up(min(block_e, _round_up(E, 8)), 8)
    n_pad = _round_up(N, bn)
    e_pad = _round_up(E, be)

    # --- glue: radial ([E,1] column, no [E,3] tile), padding, weight casts ---
    coord_diff = coord[row] - coord[col]                             # [E, 3]
    radial = jnp.sum(coord_diff * coord_diff, axis=1, keepdims=True)  # [E, 1]

    h_p = jnp.pad(h.astype(f32), ((0, n_pad - N), (0, 0)))
    batch_col = jnp.pad(batch.astype(jnp.int32).reshape(N, 1),
                        ((0, n_pad - N), (0, 0)), constant_values=-1)
    row_col = jnp.pad(row.astype(jnp.int32).reshape(E, 1),
                      ((0, e_pad - E), (0, 0)), constant_values=-1)
    radial_p = jnp.pad(radial.astype(f32), ((0, e_pad - E), (0, 0)))

    # Weights go through the MXU -> cast to compute dtype once in HBM.
    w1a = params["w1a"].astype(cdt)
    w1b = params["w1b"].astype(cdt)
    w2 = params["w2"].astype(cdt)
    w3a = params["w3a"].astype(cdt)
    w3b = params["w3b"].astype(cdt)
    w4 = params["w4"].astype(cdt)
    # Elementwise path stays f32 (v5e has no bf16 VPU/EUP).
    w1r = params["w1r"].astype(f32)
    b1 = params["b1"].astype(f32)
    b2 = params["b2"].astype(f32)
    b3 = params["b3"].astype(f32)
    b4 = params["b4"].astype(f32)

    const = lambda *_: (0, 0)   # weight/bias blocks stay VMEM-resident

    # --- kernel 1: node projections ---
    pa, pb = pl.pallas_call(
        functools.partial(proj_kernel, compute_dtype=cdt),
        grid=(n_pad // bn,),
        in_specs=[pl.BlockSpec((bn, F), lambda i: (i, 0)),
                  pl.BlockSpec((F, H), const),
                  pl.BlockSpec((F, H), const),
                  pl.BlockSpec((1, H), const)],
        out_specs=(pl.BlockSpec((bn, H), lambda i: (i, 0)),
                   pl.BlockSpec((bn, H), lambda i: (i, 0))),
        out_shape=(jax.ShapeDtypeStruct((n_pad, H), f32),
                   jax.ShapeDtypeStruct((n_pad, H), f32)),
        compiler_params=pltpu.CompilerParams(
            dimension_semantics=("parallel",),
            vmem_limit_bytes=vmem_limit_bytes),
    )(h_p, w1a, w1b, b1)

    # --- glue: per-edge gather of the hoisted projections ---
    # TODO(synk): move this gather in-kernel (per-row DMA with scalar-prefetched
    # row/col) to avoid the [E,H] HBM round-trip; XLA gather is used for now.
    pre = pa[row] + pb[col]                                          # [E, H]
    pre_p = jnp.pad(pre, ((0, e_pad - E), (0, 0)))

    # --- kernel 2: edge MLP + segment-sum (accumulated across E tiles) ---
    agg = pl.pallas_call(
        functools.partial(edge_kernel, compute_dtype=cdt),
        grid=(e_pad // be,),
        in_specs=[pl.BlockSpec((be, H), lambda e: (e, 0)),
                  pl.BlockSpec((be, 1), lambda e: (e, 0)),
                  pl.BlockSpec((be, 1), lambda e: (e, 0)),
                  pl.BlockSpec((1, H), const),
                  pl.BlockSpec((H, H), const),
                  pl.BlockSpec((1, H), const)],
        out_specs=pl.BlockSpec((n_pad, H), const),
        out_shape=jax.ShapeDtypeStruct((n_pad, H), f32),
        compiler_params=pltpu.CompilerParams(
            dimension_semantics=("arbitrary",),
            vmem_limit_bytes=vmem_limit_bytes),
    )(pre_p, radial_p, row_col, w1r, w2, b2)

    # --- kernel 3: node MLP + residual + per-graph scatter-add ---
    h_out, h_scatter = pl.pallas_call(
        functools.partial(node_kernel, compute_dtype=cdt),
        grid=(n_pad // bn,),
        in_specs=[pl.BlockSpec((bn, F), lambda i: (i, 0)),
                  pl.BlockSpec((bn, H), lambda i: (i, 0)),
                  pl.BlockSpec((bn, 1), lambda i: (i, 0)),
                  pl.BlockSpec((F, H), const),
                  pl.BlockSpec((H, H), const),
                  pl.BlockSpec((1, H), const),
                  pl.BlockSpec((H, O), const),
                  pl.BlockSpec((1, O), const)],
        out_specs=(pl.BlockSpec((bn, O), lambda i: (i, 0)),
                   pl.BlockSpec((G, O), const)),
        out_shape=(jax.ShapeDtypeStruct((n_pad, O), f32),
                   jax.ShapeDtypeStruct((G, O), f32)),
        compiler_params=pltpu.CompilerParams(
            dimension_semantics=("arbitrary",),
            vmem_limit_bytes=vmem_limit_bytes),
    )(h_p, agg, batch_col, w3a, w3b, b3, w4, b4)

    return h_out[:N], None, h_scatter


# ---------------------------------------------------------------------------
# Pure-JAX reference of the PyTorch forward (for verification).
# ---------------------------------------------------------------------------
def egcl_reference(h, edge_index, coord, batch, params, num_graphs):
    row, col = edge_index
    coord_diff = coord[row] - coord[col]
    radial = jnp.sum(coord_diff ** 2, axis=1, keepdims=True)

    edge_in = jnp.concatenate([h[row], h[col], radial], axis=1)
    w1 = jnp.concatenate([params["w1a"], params["w1b"], params["w1r"]], axis=0)
    e = jax.nn.silu(edge_in @ w1 + params["b1"][0])
    e = jax.nn.silu(e @ params["w2"] + params["b2"][0])

    agg = jax.ops.segment_sum(e, row, num_segments=h.shape[0])
    node_in = jnp.concatenate([h, agg], axis=1)
    w3 = jnp.concatenate([params["w3a"], params["w3b"]], axis=0)
    n = jax.nn.silu(node_in @ w3 + params["b3"][0])
    out = n @ params["w4"] + params["b4"][0]
    h_new = h + out

    h_scatter = jax.ops.segment_sum(h_new, batch, num_segments=num_graphs)
    return h_new, None, h_scatter


def init_params(key, input_nf, output_nf, hidden_nf):
    """Deterministic synthetic parameters (shapes match E_GCL.__init__)."""
    ks = jax.random.split(key, 8)
    s = 0.1
    # edge_mlp: Linear(2*input_nf + 1, hidden) -> SiLU -> Linear(hidden, hidden) -> SiLU
    w1 = jax.random.normal(ks[0], (2 * input_nf + 1, hidden_nf), jnp.float32) * s
    # node_mlp: Linear(hidden + input_nf, hidden) -> SiLU -> Linear(hidden, output_nf)
    w3 = jax.random.normal(ks[1], (input_nf + hidden_nf, hidden_nf), jnp.float32) * s
    return {
        "w1a": w1[:input_nf],
        "w1b": w1[input_nf:2 * input_nf],
        "w1r": w1[2 * input_nf:2 * input_nf + 1],
        "b1": jax.random.normal(ks[2], (1, hidden_nf), jnp.float32) * s,
        "w2": jax.random.normal(ks[3], (hidden_nf, hidden_nf), jnp.float32) * s,
        "b2": jax.random.normal(ks[4], (1, hidden_nf), jnp.float32) * s,
        "w3a": w3[:input_nf],
        "w3b": w3[input_nf:],
        "b3": jax.random.normal(ks[5], (1, hidden_nf), jnp.float32) * s,
        "w4": jax.random.normal(ks[6], (hidden_nf, output_nf), jnp.float32) * s,
        "b4": jax.random.normal(ks[7], (1, output_nf), jnp.float32) * s,
    }


if __name__ == "__main__":
    # Small-but-lane-dense shapes: 64 nodes, 256 directed edges, 2 graphs,
    # 128 features (lane-dense matmuls and stores; residual needs O == F).
    N, E, G = 64, 256, 2
    input_nf = output_nf = hidden_nf = 128

    key = jax.random.PRNGKey(0)
    k_h, k_c, k_r, k_cc, k_p = jax.random.split(key, 5)

    h = jax.random.normal(k_h, (N, input_nf), jnp.float32)
    coord = jax.random.normal(k_c, (N, 3), jnp.float32)
    row = jax.random.randint(k_r, (E,), 0, N, jnp.int32)
    col = jax.random.randint(k_cc, (E,), 0, N, jnp.int32)
    batch = jnp.repeat(jnp.arange(G, dtype=jnp.int32), N // G)
    params = init_params(k_p, input_nf, output_nf, hidden_nf)

    # Pure-JAX reference of the PyTorch semantics.
    h_ref, _, hs_ref = egcl_reference(h, (row, col), coord, batch, params, G)

    # f32 compute path (tight check). Tiles chosen so the grids are exercised.
    h_new, _, h_scatter = egcl_forward(
        h, (row, col), coord, batch, params, G,
        block_n=32, block_e=128, compute_dtype=jnp.float32)
    jax.block_until_ready((h_new, h_scatter))
    assert jnp.allclose(h_new, h_ref, atol=1e-4, rtol=1e-4), "h mismatch (f32)"
    assert jnp.allclose(h_scatter, hs_ref, atol=1e-4, rtol=1e-4), "h_scatter mismatch (f32)"

    # bf16 MXU path (2x throughput, half the weight traffic), loose check.
    h_bf, _, hs_bf = egcl_forward(
        h, (row, col), coord, batch, params, G,
        block_n=32, block_e=128, compute_dtype=jnp.bfloat16)
    jax.block_until_ready((h_bf, hs_bf))
    assert jnp.allclose(h_bf, h_ref, atol=1e-1, rtol=1e-1), "h mismatch (bf16)"
    assert jnp.allclose(hs_bf, hs_ref, atol=3e-1, rtol=1e-1), "h_scatter mismatch (bf16)"

    print("KERNEL_OK")
</pallas_src>

<mosaic_0001>
module attributes {stable_mosaic.version = 11 : i64} {
  func.func @proj_kernel(%arg0: i32, %arg1: memref<32x128xf32, #tpu.memory_space<vmem>>, %arg2: memref<128x128xf32, #tpu.memory_space<vmem>>, %arg3: memref<128x128xf32, #tpu.memory_space<vmem>>, %arg4: memref<1x128xf32, #tpu.memory_space<vmem>>, %arg5: memref<32x128xf32, #tpu.memory_space<vmem>>, %arg6: memref<32x128xf32, #tpu.memory_space<vmem>>) attributes {dimension_semantics = [#tpu.dimension_semantics<parallel>], iteration_bounds = array<i64: 2>, scalar_prefetch = 0 : i64, scratch_operands = 0 : i64, tpu.core_type = #tpu.core_type<tc>, window_params = [{transform_indices = @transform_0, window_bounds = array<i64: 32, 128>}, {pipeline_mode = #tpu.pipeline_mode<synchronous>, transform_indices = @transform_1, window_bounds = array<i64: 128, 128>}, {pipeline_mode = #tpu.pipeline_mode<synchronous>, transform_indices = @transform_2, window_bounds = array<i64: 128, 128>}, {pipeline_mode = #tpu.pipeline_mode<synchronous>, transform_indices = @transform_3, window_bounds = array<i64: 1, 128>}, {transform_indices = @transform_4, window_bounds = array<i64: 32, 128>}, {transform_indices = @transform_5, window_bounds = array<i64: 32, 128>}]} {
    %c0 = arith.constant 0 : index
    %c0_0 = arith.constant 0 : index
    %0 = vector.load %arg1[%c0, %c0_0] : memref<32x128xf32, #tpu.memory_space<vmem>>, vector<32x128xf32>
    %c0_1 = arith.constant 0 : index
    %c0_2 = arith.constant 0 : index
    %1 = vector.load %arg2[%c0_1, %c0_2] : memref<128x128xf32, #tpu.memory_space<vmem>>, vector<128x128xf32>
    %cst = arith.constant dense<0.000000e+00> : vector<32x128xf32>
    %2 = tpu.matmul %0, %1, %cst {dimension_numbers = #tpu.dot_dimension_numbers<[1], [0], [0], [1], [0, 0, 1, 1], [], []>} : vector<32x128xf32>, vector<128x128xf32>, vector<32x128xf32> -> vector<32x128xf32>
    %c0_3 = arith.constant 0 : index
    %c0_4 = arith.constant 0 : index
    %3 = vector.load %arg4[%c0_3, %c0_4] : memref<1x128xf32, #tpu.memory_space<vmem>>, vector<1x128xf32>
    %4 = vector.broadcast %3 : vector<1x128xf32> to vector<32x128xf32>
    %5 = arith.addf %2, %4 : vector<32x128xf32>
    %c0_5 = arith.constant 0 : index
    %c0_6 = arith.constant 0 : index
    %6 = vector.load %arg5[%c0_5, %c0_6] : memref<32x128xf32, #tpu.memory_space<vmem>>, vector<32x128xf32>
    tpu.vector_store %arg5[%c0_5, %c0_6], %5 {strides = array<i32>} : memref<32x128xf32, #tpu.memory_space<vmem>>, vector<32x128xf32>,
    %c0_7 = arith.constant 0 : index
    %c0_8 = arith.constant 0 : index
    %7 = vector.load %arg3[%c0_7, %c0_8] : memref<128x128xf32, #tpu.memory_space<vmem>>, vector<128x128xf32>
    %cst_9 = arith.constant dense<0.000000e+00> : vector<32x128xf32>
    %8 = tpu.matmul %0, %7, %cst_9 {dimension_numbers = #tpu.dot_dimension_numbers<[1], [0], [0], [1], [0, 0, 1, 1], [], []>} : vector<32x128xf32>, vector<128x128xf32>, vector<32x128xf32> -> vector<32x128xf32>
    %c0_10 = arith.constant 0 : index
    %c0_11 = arith.constant 0 : index
    %9 = vector.load %arg6[%c0_10, %c0_11] : memref<32x128xf32, #tpu.memory_space<vmem>>, vector<32x128xf32>
    tpu.vector_store %arg6[%c0_10, %c0_11], %8 {strides = array<i32>} : memref<32x128xf32, #tpu.memory_space<vmem>>, vector<32x128xf32>,
    return
  }
  func.func @transform_0(%arg0: i32) -> (i32, i32) {
    %c0_i32 = arith.constant 0 : i32
    %c0_i32_0 = arith.constant 0 : i32
    return %arg0, %c0_i32 : i32, i32
  }
  func.func @transform_1(%arg0: i32) -> (i32, i32) {
    %c0_i32 = arith.constant 0 : i32
    %c0_i32_0 = arith.constant 0 : i32
    %c0_i32_1 = arith.constant 0 : i32
    return %c0_i32, %c0_i32_0 : i32, i32
  }
  func.func @transform_2(%arg0: i32) -> (i32, i32) {
    %c0_i32 = arith.constant 0 : i32
    %c0_i32_0 = arith.constant 0 : i32
    %c0_i32_1 = arith.constant 0 : i32
    return %c0_i32, %c0_i32_0 : i32, i32
  }
  func.func @transform_3(%arg0: i32) -> (i32, i32) {
    %c0_i32 = arith.constant 0 : i32
    %c0_i32_0 = arith.constant 0 : i32
    %c0_i32_1 = arith.constant 0 : i32
    return %c0_i32, %c0_i32_0 : i32, i32
  }
  func.func @transform_4(%arg0: i32) -> (i32, i32) {
    %c0_i32 = arith.constant 0 : i32
    %c0_i32_0 = arith.constant 0 : i32
    return %arg0, %c0_i32 : i32, i32
  }
  func.func @transform_5(%arg0: i32) -> (i32, i32) {
    %c0_i32 = arith.constant 0 : i32
    %c0_i32_0 = arith.constant 0 : i32
    return %arg0, %c0_i32 : i32, i32
  }
}

</mosaic_0001>

<bundles_post_ra>
// kernel: tpu_custom_call.1
= control target key start
LH: loop header
LB: loop body
LE: loop exit
PB: predicated region body
PF: predicated region fallthrough
CT: control target
= control target key end

     0   :  { %11 = vsyncpa [#allocation3], 0  ;;  %s1355_s0 = inlined_call_operand.hbm [shape: f32[64,128], index: 0, kind: input, shape index: {}]   ;;  %s1356_s1 = inlined_call_operand.hbm [shape: f32[128,128], index: 1, kind: input, shape index: {}]   ;;  %s1357_s2 = inlined_call_operand.hbm [shape: f32[128,128], index: 2, kind: input, shape index: {}]   ;;  %s1358_s3 = inlined_call_operand.vmem [shape: f32[1,128], index: 3, kind: input, shape index: {}]   ;;  %s1359_s4 = inlined_call_operand.hbm [shape: f32[64,128], index: 4, kind: output, shape index: {0}]   ;;  %s1360_s5 = inlined_call_operand.hbm [shape: f32[64,128], index: 5, kind: output, shape index: {1}]  }
   0x1   :  { %13 = vsyncpa [#allocation3 + $0x1], 0 }
   0x2   :  { %14 = vsyncpa [#allocation6], 0 }
   0x3   :  { %15 = vsyncpa [#allocation4], 0 }
   0x4   :  { %17 = vsyncpa [#allocation4 + $0x1], 0 }
   0x5   :  { %18 = vsyncpa [#allocation10], 0 }
   0x6   :  { %20 = vsyncpa [#allocation10 + $0x1], 0  ;;  %s1103_s18 = smov 0   ;;  %s1105_s19 = smov 0  }
   0x7   :  { %s1107_s20 = smov 0   ;;  %s1109_s21 = smov 0  }
   0x8 LB: > { %s1124_s22 = sadd.s32 4294967295, %s1062_s21   ;;  %s666_s23 = sadd.s32 4294967294, %s1062_s21   ;;  %s1062_s21 = sphi %s1109_s21, %s1383_s21   ;;  %s1058_s20 = sphi %s1107_s20, %s1382_s20   ;;  %s1054_s19 = sphi %s1105_s19, %s1381_s19   ;;  %s1050_s18 = sphi %s1103_s18, %s1380_s18  }
   0x9   : > { %p46_p0 = scmp.ne.s32.totalorder %s1054_s19, %s1050_s18  ;;  %p1361_p1 = scmp.eq.s32.totalorder %s1124_s22, 0 }
   0xa   : > { %p133_p2 = scmp.eq.s32.totalorder %s1124_s22, 1  ;;  %p139_p3 = scmp.eq.s32.totalorder %s666_s23, 1 }
   0xb   : > { %p1133_p4 = por %p1361_p1, %p46_p0  ;;  %p667_p5 = scmp.ge.s32.totalorder %s1062_s21, 1 }
   0xc   : > { %p1138_p6 = por %p139_p3, %p46_p0  ;;  %p172_p7 = scmp.lt.s32.totalorder %s1062_s21, 3 }
   0xd   : > { %s1366_s24 = scalar_select %p1133_p4, 1, 0 }
   0xe   : > { %s1367_s25 = scalar_select %p1138_p6, 1, 0 }
   0xf   : > { %p1143_p8 = pnand %p667_p5, %p172_p7  ;;  %s1064_s27 = smov [#allocation5]  }
  0x10   : > { %s184_s28 = sshll.u32 %s1064_s27, 4  ;;  %s1065_s30 = smov [#allocation7]   ;;  %s185_s28 = int_to_ptr.vmem [resolvable:$true] %s184_s28 }
  0x11   : > { %s1368_s26 = scalar_select %p1143_p8, 1, 0 }
  0x12   : > { %p822_p9 = pneg %p1143_p8  ;;  %s197_s6 = sshll.u32 %s1065_s30, 4  ;;  %s198_s6 = int_to_ptr.vmem [resolvable:$true] %s197_s6 }
  0x13   : > { %s895_s7 = scalar_lea.vmem %s185_s28, 2048  ;;  %p903_p5 = scmp.lt.s32.totalorder %s185_s28, %s185_s28 }
  0x14   : > { %p1152_p11 = pnand %p822_p9, %p1361_p1  ;;  %p896_p13 = scmp.ne.s32.totalorder %s185_s28, %s895_s7 }
  0x15   : > { %p904_p7 = scmp.lt.s32.totalorder %s895_s7, %s895_s7 }
  0x16   : > { %p886_p12 = pneg %p1152_p11 }
  0x17   : > { %p905_p10 = por %p904_p7, %p903_p5 }
  0x18   : > { %p898_p0 = pnand %p896_p13, %p886_p12 }
  0x1a   : > { %p899_p3 = pneg %p898_p0 }
  0x1c   : > { %p906_p9 = pnand %p905_p10, %p899_p3 }
  0x1e   : > { %909 = shalt.err (!%p906_p9)
}
  0x1f   : > { %s1362_s8 = smov 128   ;;  %s1067_s9 = smov 8  }
  0x20   : > { %825 = dma.hbm_to_vmem [thread:$0]  (!%p1152_p11), %s1356_s1, 2048, %s185_s28, [#allocation6], %s1362_s8, %s1362_s8, %s1067_s9  }
  0x21   : > { %s921_s12 = scalar_lea.vmem %s198_s6, 2048  ;;  %p929_p10 = scmp.lt.s32.totalorder %s198_s6, %s198_s6 }
  0x22   : > { %p922_p13 = scmp.ne.s32.totalorder %s198_s6, %s921_s12  ;;  %p930_p3 = scmp.lt.s32.totalorder %s921_s12, %s921_s12 }
  0x24   : > { %p924_p0 = pnand %p922_p13, %p886_p12  ;;  %p931_p7 = por %p930_p3, %p929_p10 }
  0x26   : > { %p925_p5 = pneg %p924_p0 }
  0x28   : > { %p932_p9 = pnand %p931_p7, %p925_p5 }
  0x2a   : > { %935 = shalt.err (!%p932_p9)
}
  0x2b   : > { %828 = dma.hbm_to_vmem [thread:$0]  (!%p1152_p11), %s1357_s2, 2048, %s198_s6, [#allocation6], %s1362_s8, %s1362_s8, %s1067_s9  }
  0x2c   : > { %s1181_s15 = sadd.s32 1, %s1062_s21   ;;  %s33_s16 = sadd.s32 1, %s1058_s20 }
  0x2d   : > { %s30_s17 = ssub.s32 %s1062_s21, %s1181_s15  ;;  %p40_p12 = scmp.ne.s32.totalorder %s1058_s20, %s1054_s19 }
  0x2e   : > { %p31_p13 = scmp.eq.s32.totalorder %s30_s17, 0  ;;  %p41_p0 = scmp.eq.s32.totalorder %s1062_s21, 0 }
  0x2f   : > { %p1191_p5 = por %p133_p2, %p40_p12  ;;  %p842_p10 = scmp.lt.s32.totalorder %s1062_s21, 2 }
  0x30   : > { %s1197_s27 = scalar_select %p31_p13, %s1058_s20, %s33_s16  }
  0x31   : > { %s1370_s23 = scalar_select %p1191_p5, 1, 0 }
  0x32   : > { %p42_p3 = por %p41_p0, %p40_p12  ;;  %s214_s28 = sand.u32 1, %s1058_s20  }
  0x33   : > { %s671_s29 = sshll.u32 %s214_s28, 5  ;;  %s689_s30 = sshll.u32 %s1062_s21, 9 }
  0x34   : > { %s1204_s10 = scalar_lea.hbm %s1355_s0, %s689_s30  ;;  %s218_s11 = scalar_lea.vmem [#allocation2], %s671_s29 }
  0x35   : > { %s225_s12 = sshll.u32 %s218_s11, 4  ;;  %p1208_p2 = pnand %p842_p10, %p42_p3  ;;  %s1206_s12 = int_to_ptr.vmem [resolvable:$true] %s225_s12 }
  0x36   : > { %s1212_s14 = scalar_lea.sflag [#allocation3], %s214_s28  ;;  %s936_s16 = scalar_lea.hbm %s1204_s10, 512 }
  0x37   : > { %p937_p11 = scmp.ne.s32.totalorder %s1204_s10, %s936_s16  ;;  %p938_p7 = pneg %p1208_p2 }
  0x38   : > { %s941_s29 = scalar_lea.hbm %s1355_s0, 1024  ;;  %p942_p13 = scmp.lt.s32.totalorder %s1204_s10, %s1355_s0 }
  0x39   : > { %p939_p9 = pnand %p938_p7, %p937_p11  ;;  %p943_p0 = scmp.lt.s32.totalorder %s941_s29, %s936_s16 }
  0x3b   : > { %p940_p12 = pneg %p939_p9  ;;  %p944_p10 = por %p943_p0, %p942_p13 }
  0x3d   : > { %p945_p3 = pnand %p944_p10, %p940_p12 }
  0x3f   : > { %948 = shalt.err (!%p945_p3)
}
  0x40   : > { %s949_s28 = scalar_lea.vmem %s1206_s12, 512  ;;  %s1068_s11 = smov [#allocation2]  }
  0x41   : > { %p950_p1 = scmp.ne.s32.totalorder %s1206_s12, %s949_s28  ;;  %s954_s8 = sshll.u32 %s1068_s11, 4  ;;  %s955_s8 = int_to_ptr.vmem [resolvable:$false] %s954_s8 }
  0x42   : > { %s956_s17 = scalar_lea.vmem %s955_s8, 1024  ;;  %p957_p9 = scmp.lt.s32.totalorder %s1206_s12, %s955_s8 }
  0x43   : > { %p952_p6 = pnand %p950_p1, %p938_p7  ;;  %p958_p5 = scmp.lt.s32.totalorder %s956_s17, %s949_s28 }
  0x45   : > { %p953_p11 = pneg %p952_p6  ;;  %p959_p4 = por %p958_p5, %p957_p9 }
  0x47   : > { %p960_p8 = pnand %p959_p4, %p953_p11 }
  0x49   : > { %963 = shalt.err (!%p960_p8)
}
  0x4a   : > { %s1372_s16 = smov 128   ;;  %p1373_p1 = scmp.ne.s32.totalorder %s1368_s26, 0 }
  0x4b   : > { %832 = dma.hbm_to_vmem [thread:$0]  (!%p1208_p2), %s1204_s10, 512, %s1206_s12, %s1212_s14, %s1372_s16, %s1372_s16, %s1067_s9  }
  0x4c   : > { %237 = sbr.rel (%p1373_p1) target bundleno = 355 (0x163), region = 36  ;;  %s1239_s30 = sand.u32 (!%p1373_p1), 1, %s1054_s19  }
  0x4d   : > { %s1242_s8 = sshll.u32 (!%p1373_p1), %s1239_s30, 5  ;;  %s240_s13 = scalar_lea.sflag (!%p1373_p1), [#allocation3], %s1239_s30 }
  0x4e   : > { %s1246_s29 = scalar_lea.vmem (!%p1373_p1), [#allocation2], %s1242_s8  ;;  %p1374_p4 = scmp.ne.s32.totalorder (!%p1373_p1), %s1366_s24, 0 }
  0x51   : > { %1033 = dma.done.wait (%p1374_p4), %s240_s13, 512  }
  0x52   : > { %1035 = vsyncadd (%p1374_p4), %s240_s13, 4294966784  ;;  %p1375_p6 = scmp.eq.s32.totalorder %s1124_s22, 0 }
  0x54   : > { %1037 = dma.done.wait (%p1375_p6), [#allocation6], 4096   ;;  %p1376_p8 = pmov %p1375_p6 }
  0x55   : > { %v305_v0 = vld [vmem:[#allocation5 + $0x78] sm:$0xff]  ;;  %v304_v2 = vld [vmem:[#allocation5 + $0x70] sm:$0xff]  ;;  %v303_v4 = vld [vmem:[#allocation5 + $0x68] sm:$0xff]  ;;  %s282_s9 = scalar_lea.vmem [#allocation9], %s1242_s8  ;;  %s690_s12 = sshll.u32 %s1124_s22, 9 }
  0x56   : > { %1039 = vsyncadd (%p1376_p8), [#allocation6], 4294963200  ;;  %v417_v1 = vld [vmem:[#allocation7 + $0x78] sm:$0xff]  ;;  %732 = vmatprep.subr.mxu0 %v305_v0  ;;  %v416_v3 = vld [vmem:[#allocation7 + $0x70] sm:$0xff]  ;;  %s542_s10 = sshll.u32 %s282_s9, 4  ;;  %s1266_s14 = scalar_lea.vmem [#allocation8], %s1242_s8  ;;  %s1270_s10 = int_to_ptr.vmem [resolvable:$true] %s542_s10 }
  0x57   : > { %770 = vmatprep.subr.mxu1 %v417_v1  ;;  %733 = vmatpush3.msra.mxu0 %v305_v0  ;;  %v415_v5 = vld [vmem:[#allocation7 + $0x68] sm:$0xff]  ;;  %v302_v6 = vld [vmem:[#allocation5 + $0x60] sm:$0xff]  ;;  %v301_v8 = vld [vmem:[#allocation5 + $0x58] sm:$0xff]  ;;  %s526_s6 = sshll.u32 %s1266_s14, 4  ;;  %s1276_s28 = scalar_lea.hbm %s1360_s5, %s690_s12  ;;  %s1278_s6 = int_to_ptr.vmem [resolvable:$true] %s526_s6 }
  0x58   : > { %771 = vmatpush3.msra.mxu1 %v417_v1  ;;  %734 = vmatprep.subr.mxu0 %v304_v2  ;;  %v414_v7 = vld [vmem:[#allocation7 + $0x60] sm:$0xff]  ;;  %v413_v9 = vld [vmem:[#allocation7 + $0x58] sm:$0xff]  ;;  %v300_v10 = vld [vmem:[#allocation5 + $0x50] sm:$0xff]  ;;  %s1284_s16 = scalar_lea.hbm %s1359_s4, %s690_s12  ;;  %s513_s8 = scalar_lea.sflag [#allocation10], %s1239_s30 }
  0x59   : > { %772 = vmatprep.subr.mxu1 %v416_v3  ;;  %735 = vmatpush3.msra.mxu0 %v304_v2  ;;  %v412_v11 = vld [vmem:[#allocation7 + $0x50] sm:$0xff]  ;;  %v299_v12 = vld [vmem:[#allocation5 + $0x48] sm:$0xff]  ;;  %v298_v14 = vld [vmem:[#allocation5 + $0x40] sm:$0xff]  ;;  %s964_s13 = scalar_lea.vmem %s1270_s10, 512  ;;  %p1377_p2 = scmp.ne.s32.totalorder %s1370_s23, 0 }
  0x5a   : > { %773 = vmatpush3.msra.mxu1 %v416_v3  ;;  %736 = vmatprep.subr.mxu0 %v303_v4  ;;  %v411_v13 = vld [vmem:[#allocation7 + $0x48] sm:$0xff]  ;;  %v410_v15 = vld [vmem:[#allocation7 + $0x40] sm:$0xff]  ;;  %v297_v16 = vld [vmem:[#allocation5 + $0x38] sm:$0xff]  ;;  %p965_p5 = scmp.ne.s32.totalorder %s1270_s10, %s964_s13 }
  0x5b   : > { %774 = vmatprep.subr.mxu1 %v415_v5  ;;  %737 = vmatpush3.msra.mxu0 %v303_v4  ;;  %v409_v17 = vld [vmem:[#allocation7 + $0x38] sm:$0xff]  ;;  %v296_v18 = vld [vmem:[#allocation5 + $0x30] sm:$0xff]  ;;  %v295_v20 = vld [vmem:[#allocation5 + $0x28] sm:$0xff] }
  0x5c   : > { %775 = vmatpush3.msra.mxu1 %v415_v5  ;;  %738 = vmatprep.subr.mxu0 %v302_v6  ;;  %v408_v19 = vld [vmem:[#allocation7 + $0x30] sm:$0xff]  ;;  %v407_v21 = vld [vmem:[#allocation7 + $0x28] sm:$0xff]  ;;  %v294_v22 = vld [vmem:[#allocation5 + $0x20] sm:$0xff]  ;;  %p966_p7 = pnand %p965_p5, %p1377_p2 }
  0x5d   : > { %776 = vmatprep.subr.mxu1 %v414_v7  ;;  %739 = vmatpush3.msra.mxu0 %v302_v6  ;;  %v406_v23 = vld [vmem:[#allocation7 + $0x20] sm:$0xff]  ;;  %v293_v24 = vld [vmem:[#allocation5 + $0x18] sm:$0xff]  ;;  %v292_v26 = vld [vmem:[#allocation5 + $0x10] sm:$0xff] }
  0x5e   : > { %777 = vmatpush3.msra.mxu1 %v414_v7  ;;  %740 = vmatprep.subr.mxu0 %v301_v8  ;;  %v405_v25 = vld [vmem:[#allocation7 + $0x18] sm:$0xff]  ;;  %v404_v27 = vld [vmem:[#allocation7 + $0x10] sm:$0xff]  ;;  %v291_v28 = vld [vmem:[#allocation5 + $0x8] sm:$0xff]  ;;  %p967_p12 = pneg %p966_p7 }
  0x5f   : > { %778 = vmatprep.subr.mxu1 %v413_v9  ;;  %741 = vmatpush3.msra.mxu0 %v301_v8  ;;  %v403_v29 = vld [vmem:[#allocation7 + $0x8] sm:$0xff]  ;;  %v290_v30 = vld [vmem:[#allocation5] sm:$0xff]  ;;  %v288_v34 = vld [vmem:[%s1246_s29 + $0x10] sm:$0xff] }
  0x60   : > { %779 = vmatpush3.msra.mxu1 %v413_v9  ;;  %742 = vmatprep.subr.mxu0 %v300_v10  ;;  %v402_v31 = vld [vmem:[#allocation7] sm:$0xff]  ;;  %v287_v33 = vld [vmem:[%s1246_s29 + $0x8] sm:$0xff]  ;;  %v289_v35 = vld [vmem:[%s1246_s29 + $0x18] sm:$0xff] }
  0x61   : > { %780 = vmatprep.subr.mxu1 %v412_v11  ;;  %743 = vmatpush3.msra.mxu0 %v300_v10  ;;  %v286_v32 = vld [vmem:[%s1246_s29] sm:$0xff]  ;;  %s1069_s29 = smov [#allocation9]  }
  0x62   : > { %781 = vmatpush3.msra.mxu1 %v412_v11  ;;  %744 = vmatprep.subr.mxu0 %v299_v12  ;;  %v680_v36 = vld [vmem:[%s1358_s3] ss:$0 sm:$0xff]  ;;  %s968_s24 = sshll.u32 %s1069_s29, 4  ;;  %s969_s24 = int_to_ptr.vmem [resolvable:$false] %s968_s24 }
  0x63   : > { %782 = vmatprep.subr.mxu1 %v411_v13  ;;  %745 = vmatpush3.msra.mxu0 %v299_v12  ;;  %s970_s26 = scalar_lea.vmem %s969_s24, 1024  ;;  %p971_p13 = scmp.lt.s32.totalorder %s1270_s10, %s969_s24 }
  0x64   : > { %783 = vmatpush3.msra.mxu1 %v411_v13  ;;  %746 = vmatprep.subr.mxu0 %v298_v14  ;;  %p972_p0 = scmp.lt.s32.totalorder %s970_s26, %s964_s13 }
  0x65   : > { %784 = vmatprep.subr.mxu1 %v410_v15  ;;  %747 = vmatpush3.msra.mxu0 %v298_v14 }
  0x66   : > { %785 = vmatpush3.msra.mxu1 %v410_v15  ;;  %748 = vmatprep.subr.mxu0 %v297_v16  ;;  %p973_p10 = por %p972_p0, %p971_p13 }
  0x67   : > { %786 = vmatprep.subr.mxu1 %v409_v17  ;;  %749 = vmatpush3.msra.mxu0 %v297_v16 }
  0x68   : > { %787 = vmatpush3.msra.mxu1 %v409_v17  ;;  %750 = vmatprep.subr.mxu0 %v296_v18  ;;  %p974_p3 = pnand %p973_p10, %p967_p12 }
  0x69   : > { %788 = vmatprep.subr.mxu1 %v408_v19  ;;  %751 = vmatpush3.msra.mxu0 %v296_v18 }
  0x6a   : > { %789 = vmatpush3.msra.mxu1 %v408_v19  ;;  %752 = vmatprep.subr.mxu0 %v295_v20 }
  0x6b   : > { %790 = vmatprep.subr.mxu1 %v407_v21  ;;  %753 = vmatpush3.msra.mxu0 %v295_v20 }
  0x6c   : > { %791 = vmatpush3.msra.mxu1 %v407_v21  ;;  %754 = vmatprep.subr.mxu0 %v294_v22 }
  0x6d   : > { %792 = vmatprep.subr.mxu1 %v406_v23  ;;  %755 = vmatpush3.msra.mxu0 %v294_v22 }
  0x6e   : > { %793 = vmatpush3.msra.mxu1 %v406_v23  ;;  %756 = vmatprep.subr.mxu0 %v293_v24 }
  0x6f   : > { %794 = vmatprep.subr.mxu1 %v405_v25  ;;  %757 = vmatpush3.msra.mxu0 %v293_v24 }
  0x70   : > { %795 = vmatpush3.msra.mxu1 %v405_v25  ;;  %758 = vmatprep.subr.mxu0 %v292_v26 }
  0x71   : > { %796 = vmatprep.subr.mxu1 %v404_v27  ;;  %759 = vmatpush3.msra.mxu0 %v292_v26 }
  0x72   : > { %797 = vmatpush3.msra.mxu1 %v404_v27  ;;  %760 = vmatprep.subr.mxu0 %v291_v28 }
  0x73   : > { %798 = vmatprep.subr.mxu1 %v403_v29  ;;  %761 = vmatpush3.msra.mxu0 %v291_v28 }
  0x74   : > { %799 = vmatpush3.msra.mxu1 %v403_v29  ;;  %762 = vmatprep.subr.mxu0 %v290_v30 }
  0x75   : > { %800 = vmatprep.subr.mxu1 %v402_v31  ;;  %763 = vmatpush3.msra.mxu0 %v290_v30 }
  0x76   : > { %764 = vmatprep.mubr.f32.mxu0 %v286_v32  ;;  %801 = vmatpush3.msra.mxu1 %v402_v31 }
  0x77   : > { %802 = vmatprep.mubr.f32.mxu1 %v286_v32  ;;  %765 = vmatmul.mubr.f32.vlgmr.msra.gmra.mxu0 %v287_v33 }
  0x78   : > { %803 = vmatmul.mubr.f32.vlgmr.msra.gmra.mxu1 %v287_v33  ;;  %767 = vmatprep.mubr.f32.mxu0 %v288_v34 }
  0x79   : > { %805 = vmatprep.mubr.f32.mxu1 %v288_v34 }
  0x7b   : > { %768 = vmatmul.mubr.f32.gmra.mxu0 %v289_v35 }
  0x7c   : > { %806 = vmatmul.mubr.f32.gmra.mxu1 %v289_v35 }
 0x137   : > { %v766_v37 = vpop.f32.mrf.mxu0 }
 0x138   : > { %v804_v38 = vpop.f32.mrf.mxu1  ;;  %v385_v39 = vadd.f32 %v766_v37, %v680_v36 }
 0x139   : > { %504 = vst [vmem:[%s282_s9 + $0x8] sm:$0xff] %v804_v38  ;;  %v379_v40 = vpop.f32.mrf.mxu0 }
 0x13a   : > { %v484_v41 = vpop.f32.mrf.mxu1  ;;  %399 = vst [vmem:[%s1266_s14 + $0x8] sm:$0xff] %v385_v39  ;;  %v380_v42 = vadd.f32 %v680_v36, %v379_v40 }
 0x13b   : > { %503 = vst [vmem:[%s282_s9] sm:$0xff] %v484_v41  ;;  %v769_v43 = vpop.f32.mrf.mxu0 }
 0x13c   : > { %v807_v44 = vpop.f32.mrf.mxu1  ;;  %398 = vst [vmem:[%s1266_s14] sm:$0xff] %v380_v42  ;;  %v395_v45 = vadd.f32 %v769_v43, %v680_v36 }
 0x13d   : > { %506 = vst [vmem:[%s282_s9 + $0x18] sm:$0xff] %v807_v44  ;;  %v389_v46 = vpop.f32.mrf.mxu0 }
 0x13e   : > { %v494_v47 = vpop.f32.mrf.mxu1  ;;  %401 = vst [vmem:[%s1266_s14 + $0x18] sm:$0xff] %v395_v45  ;;  %v390_v48 = vadd.f32 %v680_v36, %v389_v46 }
 0x13f   : > { %505 = vst [vmem:[%s282_s9 + $0x10] sm:$0xff] %v494_v47 }
 0x140   : > { %977 = shalt.err (!%p974_p3)
}
 0x141   : > { %s978_s9 = scalar_lea.hbm %s1276_s28, 512  ;;  %s982_s7 = scalar_lea.hbm %s1360_s5, 1024 }
 0x142   : > { %p979_p11 = scmp.ne.s32.totalorder %s1276_s28, %s978_s9  ;;  %p983_p4 = scmp.lt.s32.totalorder %s1276_s28, %s1360_s5 }
 0x143   : > { %p984_p6 = scmp.lt.s32.totalorder %s982_s7, %s978_s9 }
 0x144   : > { %p980_p9 = pnand %p979_p11, %p1377_p2 }
 0x145   : > { %p985_p8 = por %p984_p6, %p983_p4 }
 0x146   : > { %p981_p1 = pneg %p980_p9 }
 0x148   : > { %p986_p5 = pnand %p985_p8, %p981_p1 }
 0x14a   : > { %989 = shalt.err (!%p986_p5)
}
 0x14b   : > { %s1070_s13 = smov 128   ;;  %s1071_s29 = smov 8   ;;  %400 = vst [vmem:[%s1266_s14 + $0x10] sm:$0xff] %v390_v48 }
 0x14c   : > { %819 = dma.vmem_to_hbm [thread:$0]  (%p1377_p2), %s1270_s10, 512, %s1276_s28, %s513_s8, %s1070_s13, %s1070_s13, %s1071_s29  }
 0x14d   : > { %s508_s24 = scalar_lea.sflag [#allocation4], %s1239_s30  ;;  %s990_s26 = scalar_lea.vmem %s1278_s6, 512 }
 0x14e   : > { %p991_p7 = scmp.ne.s32.totalorder %s1278_s6, %s990_s26  ;;  %s1072_s9 = smov [#allocation8]  }
 0x14f   : > { %s994_s12 = sshll.u32 %s1072_s9, 4  ;;  %s995_s12 = int_to_ptr.vmem [resolvable:$false] %s994_s12 }
 0x150   : > { %p992_p12 = pnand %p991_p7, %p1377_p2  ;;  %s996_s22 = scalar_lea.vmem %s995_s12, 1024 }
 0x151   : > { %p997_p0 = scmp.lt.s32.totalorder %s1278_s6, %s995_s12  ;;  %p998_p10 = scmp.lt.s32.totalorder %s996_s22, %s990_s26 }
 0x152   : > { %p993_p13 = pneg %p992_p12 }
 0x153   : > { %p999_p3 = por %p998_p10, %p997_p0 }
 0x155   : > { %p1000_p11 = pnand %p999_p3, %p993_p13 }
 0x157   : > { %1003 = shalt.err (!%p1000_p11)
}
 0x158   : > { %s1004_s10 = scalar_lea.hbm %s1284_s16, 512  ;;  %s1008_s28 = scalar_lea.hbm %s1359_s4, 1024 }
 0x159   : > { %p1005_p9 = scmp.ne.s32.totalorder %s1284_s16, %s1004_s10  ;;  %p1009_p6 = scmp.lt.s32.totalorder %s1284_s16, %s1359_s4 }
 0x15a   : > { %p1010_p8 = scmp.lt.s32.totalorder %s1008_s28, %s1004_s10 }
 0x15b   : > { %p1006_p1 = pnand %p1005_p9, %p1377_p2 }
 0x15c   : > { %p1011_p5 = por %p1010_p8, %p1009_p6 }
 0x15d   : > { %p1007_p4 = pneg %p1006_p1 }
 0x15f   : > { %p1012_p7 = pnand %p1011_p5, %p1007_p4 }
 0x161   : > { %1015 = shalt.err (!%p1012_p7)
}
 0x162   : > { %818 = dma.vmem_to_hbm [thread:$0]  (%p1377_p2), %s1278_s6, 512, %s1284_s16, %s508_s24, %s1070_s13, %s1070_s13, %s1071_s29  }
 0x163 PF: > { %s557_s11 = sand.u32 1, %s1050_s18   ;;  %p1378_p12 = scmp.ne.s32.totalorder %s1367_s25, 0 }
 0x164   : > { %p1379_p13 = scmp.ge.s32.totalorder %s1062_s21, 2  ;;  %s558_s17 = scalar_lea.sflag [#allocation4], %s557_s11 }
 0x166   : > { %p834_p0 = pnand %p1379_p13, %p1378_p12 }
 0x168   : > { %p835_p10 = pneg %p834_p0 }
 0x16a   : > { %1041 = dma.done.wait (%p835_p10), %s558_s17, 512  }
 0x16b   : > { %1043 = vsyncadd (%p835_p10), %s558_s17, 4294966784  ;;  %s567_s26 = scalar_lea.sflag [#allocation10], %s557_s11 }
 0x16c   : > { %1045 = dma.done.wait (%p835_p10), %s567_s26, 512  }
 0x16d   : > { %1047 = vsyncadd (%p835_p10), %s567_s26, 4294966784  ;;  %p23_p2 = scmp.ge.s32.totalorder %s1181_s15, 4   ;;  %s1380_s18 = smov %s1054_s19 }
 0x16e   : > { %s1381_s19 = smov %s1058_s20  ;;  %s1382_s20 = smov %s1197_s27 }
 0x16f   : > { %s1383_s21 = smov %s1181_s15  ;;  %25 = sbr.rel (!%p23_p2) target bundleno = 8 (0x8), region = 106 }
 0x174   :  { %572 = vsyncpa [#allocation3], 1 }
 0x175   :  { %574 = vsyncpa [#allocation3 + $0x1], 1 }
 0x176   :  { %575 = vsyncpa [#allocation6], 1 }
 0x177   :  { %576 = vsyncpa [#allocation4], 1 }
 0x178   :  { %578 = vsyncpa [#allocation4 + $0x1], 1 }
 0x179   :  { %579 = vsyncpa [#allocation10], 1 }
 0x17a   :  { %581 = vsyncpa [#allocation10 + $0x1], 1 }

</bundles_post_ra>
